<compile_context>
chip_gen: v7x
topology: tpu7x:2x2x1
jax: 0.10.0
libtpu: 0.0.40
codegen_flags: <defaults>
</compile_context>

<pallas_src>
import functools

import jax
import jax.numpy as jnp
from jax.experimental import pallas as pl
from jax.experimental.pallas import tpu as pltpu


# ---------------------------------------------------------------------------
# Pallas kernel: nearest-codebook lookup (core of EMAQuantize.forward).
# ---------------------------------------------------------------------------
def _nearest_code_kernel(x_ref, emb_ref, embt_ref, e2_ref,
                         q_ref, zq_ref, idx_ref):
    """Quantize one (tile, D) block of tokens against the full codebook.

    x_ref    : (tile, D)     input rows (native dtype, never upcast)
    emb_ref  : (D, K)        codebook                 (grid-invariant, hoisted)
    embt_ref : (K, D)        pre-transposed codebook  (grid-invariant, hoisted)
    e2_ref   : (1, K) f32    per-code squared norms   (grid-invariant, hoisted)
    q_ref    : (tile, D)     nearest codebook row per token
    zq_ref   : (tile, D)     straight-through value x + (q - x)
    idx_ref  : (1, 1, tile)  argmin code index per token, lane-dense row
    """
    x = x_ref[...]
    emb = emb_ref[...]
    emb_t = embt_ref[...]
    tile, k = x.shape[0], emb.shape[1]

    # Distance score: ||e||^2 - 2 x.e  (the per-row ||x||^2 constant is dropped;
    # argmin is unchanged).  MXU matmul, f32 accumulation, operands kept in
    # their storage dtype.
    dot = jax.lax.dot_general(
        x, emb, dimension_numbers=(((1,), (0,)), ((), ())),
        preferred_element_type=jnp.float32)                       # (tile, K)
    score = e2_ref[...] - 2.0 * dot                               # (tile, K)

    # First-index argmin (same tie-break as torch's (-dist).max(1)).
    idx_col = jnp.argmin(score, axis=-1)[:, None]                 # (tile, 1)
    iota_k = jax.lax.broadcasted_iota(jnp.int32, (tile, k), 1)
    onehot = (iota_k == idx_col).astype(jnp.float32)              # (tile, K)

    # Row gather emb_t[idx] as a one-hot matmul on the MXU, in the codebook's
    # storage dtype (exact w.r.t. the stored codebook up to MXU f32 rounding;
    # never run in a narrower dtype than the codebook).
    q32 = jax.lax.dot_general(
        onehot.astype(emb_t.dtype), emb_t,
        dimension_numbers=(((1,), (0,)), ((), ())),
        preferred_element_type=jnp.float32)                       # (tile, D)
    q_ref[...] = q32.astype(q_ref.dtype)

    # Fused straight-through forward value z_q = x + (q - x).
    x32 = x.astype(jnp.float32)
    zq_ref[...] = (x32 + (q32 - x32)).astype(zq_ref.dtype)

    # Lane-dense index row: project the one-hot onto the code iota with one
    # more tiny MXU matmul so the (1, tile) row lands directly on the lane
    # axis (no sublane->lane relayout, no (tile, 1) masked vst.msk stores).
    iota_row = jax.lax.broadcasted_iota(jnp.int32, (8, k), 1).astype(jnp.float32)
    idx8 = jax.lax.dot_general(
        iota_row, onehot, dimension_numbers=(((1,), (1,)), ((), ())),
        preferred_element_type=jnp.float32)                       # (8, tile)
    idx_ref[...] = idx8[0:1, :].reshape(1, 1, tile).astype(jnp.int32)


def _round_up(v, m):
    return -(-v // m) * m


def _pick_tile(n_rows, d, k, requested):
    """Largest 8-aligned token tile that comfortably fits scoped VMEM."""
    tile = max(8, min(_round_up(requested, 8), _round_up(n_rows, 8)))
    # Per-step VMEM: 2 buffers x 3 (tile, D) streams + ~3 (tile, K) f32
    # intermediates.  Keep under ~8 MiB so we are safe on v5e's 16 MiB scoped
    # default and leave ample headroom on v7x's 64 MiB physical VMEM.
    per_row_bytes = 24 * d + 12 * k
    budget = 8 * 1024 * 1024
    while tile > 8 and tile * per_row_bytes > budget:
        tile = max(8, (tile // 2) // 8 * 8)
    return tile


@functools.partial(jax.jit, static_argnames=("tile_n",))
def _nearest_code_pallas(x, embed, *, tile_n=1024):
    """x: (N, D) tokens, embed: (D, K) codebook -> (q (N,D), z_q (N,D), idx (N,))."""
    n, d = x.shape
    k = embed.shape[1]
    assert embed.shape[0] == d, "input feature dim must equal embed.shape[0]"

    # Hoisted, grid-invariant codebook constants (computed once, not per step).
    emb_t = embed.T                                                    # (K, D)
    e2 = jnp.sum(jnp.square(embed.astype(jnp.float32)), axis=0, keepdims=True)

    # Large tiles, no wrapper-side padding copy: cdiv grid with an overhanging
    # trailing block whose out-of-range rows are clipped / sliced off.
    tile = _pick_tile(n, d, k, tile_n)
    num_tiles = -(-n // tile)
    zq_dtype = jnp.promote_types(x.dtype, embed.dtype)

    q, z_q, idx3 = pl.pallas_call(
        _nearest_code_kernel,
        out_shape=(
            jax.ShapeDtypeStruct((n, d), embed.dtype),              # quantize
            jax.ShapeDtypeStruct((n, d), zq_dtype),                 # z_q
            jax.ShapeDtypeStruct((num_tiles, 1, tile), jnp.int32),  # lane-dense idx
        ),
        grid_spec=pltpu.PrefetchScalarGridSpec(
            num_scalar_prefetch=0,
            grid=(num_tiles,),
            in_specs=[
                pl.BlockSpec((tile, d), lambda i: (i, 0)),  # x rows
                pl.BlockSpec((d, k), lambda i: (0, 0)),     # codebook      (invariant)
                pl.BlockSpec((k, d), lambda i: (0, 0)),     # codebook^T    (invariant)
                pl.BlockSpec((1, k), lambda i: (0, 0)),     # ||e||^2       (invariant)
            ],
            out_specs=[
                pl.BlockSpec((tile, d), lambda i: (i, 0)),
                pl.BlockSpec((tile, d), lambda i: (i, 0)),
                pl.BlockSpec((1, 1, tile), lambda i: (i, 0, 0)),
            ],
        ),
        compiler_params=pltpu.CompilerParams(
            dimension_semantics=("parallel",)),  # token tiles shard across TCs (v7x)
    )(x, embed, emb_t, e2)

    idx = idx3.reshape(num_tiles * tile)[:n]
    return q, z_q, idx


# ---------------------------------------------------------------------------
# Functional EMAQuantize / EMAQuantizeList forward (eval mode values).
# ---------------------------------------------------------------------------
def ema_quantize_forward(flat, embed, *, tile_n=1024):
    """EMAQuantize.forward (eval).  flat: (N, dim), embed: (dim, n_embed)."""
    # TODO(synk): training-time EMA buffer updates (cluster_size / embed_avg
    # all_reduce + in-place copy_) are training-only state mutation and the
    # straight-through *gradient* is a backward-pass concern; only the eval
    # forward values are produced here.
    q, z_q, idx = _nearest_code_pallas(flat, embed, tile_n=tile_n)
    return z_q, idx[:, None], flat, q


def ema_quantize_reference(flat, embed):
    """Pure-JAX mirror of the torch EMAQuantize.forward math (eval)."""
    dist = (jnp.sum(flat * flat, axis=1, keepdims=True)
            - 2.0 * jnp.dot(flat, embed, precision=jax.lax.Precision.HIGHEST)
            + jnp.sum(embed * embed, axis=0, keepdims=True))
    ind = jnp.argmax(-dist, axis=1).astype(jnp.int32)
    quantize = jnp.take(embed.T, ind, axis=0)
    z_q = flat + (quantize - flat)
    return z_q, ind[:, None], flat, quantize


def ema_quantize_list_forward(x, params, *, code_mode="sum",
                              vq_fn=ema_quantize_forward):
    """EMAQuantizeList.forward (eval).  x: (batch, seq_len, dim)."""
    # TODO(synk): the small Conv2d('same')/ReLU front-end and the gate/softmax
    # mixing stay in plain XLA; only the hot per-token VQ lookup is a Pallas kernel.
    _, _, dim = x.shape
    conv_in = x[:, None, :, :]                                    # (B, 1, S, dim)
    z_q_list, idx_list, in_list, q_list = [], [], [], []
    for (w, b), embed in zip(params["convs"], params["embeds"]):
        y = jax.lax.conv_general_dilated(
            conv_in, w, window_strides=(1, 1), padding="SAME",
            dimension_numbers=("NCHW", "OIHW", "NCHW"))
        y = jax.nn.relu(y + b.reshape(1, -1, 1, 1))
        flat = y.reshape(-1, dim)
        z_q_i, idx_i, in_i, q_i = vq_fn(flat, embed)
        z_q_list.append(z_q_i)
        idx_list.append(idx_i)
        in_list.append(in_i)
        q_list.append(q_i)

    if code_mode == "sum":
        gate_in = z_q_list[0]
        gate = jnp.concatenate(
            [gate_in @ gw.T + gb for gw, gb in params["gate_proj"]], axis=-1)
        gate = jax.nn.softmax(gate, axis=-1)
        z_q = sum(z_q_list[i] * gate[:, i:i + 1] for i in range(len(z_q_list)))
    else:  # 'cat' mode: concat + Linear(num*dim, dim)
        z_q = jnp.concatenate(z_q_list, axis=-1) @ params["proj_w"].T + params["proj_b"]

    inputs = jnp.concatenate(in_list, axis=-1)
    quantizes = jnp.concatenate(q_list, axis=-1)
    argmin = jnp.concatenate(idx_list, axis=-1)
    return z_q, argmin, inputs, quantizes


def init_params(key, dim, n_embed, vqvae_list):
    num = len(vqvae_list)
    keys = jax.random.split(key, 3 * num)
    convs, embeds = [], []
    for i, kh in enumerate(vqvae_list):
        kw_, kb_, ke_ = keys[3 * i], keys[3 * i + 1], keys[3 * i + 2]
        convs.append((0.1 * jax.random.normal(kw_, (1, 1, kh, dim), jnp.float32),
                      0.1 * jax.random.normal(kb_, (1,), jnp.float32)))
        embeds.append(jax.random.normal(ke_, (dim, n_embed), jnp.float32))  # torch.randn
    gkeys = jax.random.split(jax.random.fold_in(key, 7), num)
    gate_proj = [(0.2 * jax.random.normal(gkeys[i], (1, dim), jnp.float32),
                  jnp.zeros((1,), jnp.float32)) for i in range(num)]
    return {"convs": convs, "embeds": embeds, "gate_proj": gate_proj}


if __name__ == "__main__":
    key = jax.random.PRNGKey(0)
    k_x, k_p, k_b1, k_b2 = jax.random.split(key, 4)

    # EMAQuantizeList(dim=32, n_embed=64, num=2, vqvae_list=[1, 3], code_mode='sum')
    batch, seq_len, dim, n_embed = 2, 8, 32, 64
    vqvae_list = (1, 3)

    x = jax.random.normal(k_x, (batch, seq_len, dim), dtype=jnp.float32)
    params = init_params(k_p, dim, n_embed, vqvae_list)

    # Pallas-backed forward vs pure-JAX reference forward (same conv/gate path,
    # only the VQ core differs).
    z_q, argmin, inputs, quantizes = jax.block_until_ready(
        ema_quantize_list_forward(x, params, vq_fn=ema_quantize_forward))
    z_q_r, argmin_r, inputs_r, quantizes_r = ema_quantize_list_forward(
        x, params, vq_fn=ema_quantize_reference)

    n_tok = batch * seq_len
    assert z_q.shape == (n_tok, dim)
    assert argmin.shape == (n_tok, len(vqvae_list)) and argmin.dtype == jnp.int32
    assert inputs.shape == (n_tok, len(vqvae_list) * dim)
    assert quantizes.shape == (n_tok, len(vqvae_list) * dim)
    assert bool(jnp.array_equal(argmin, argmin_r))
    assert bool(jnp.allclose(inputs, inputs_r, atol=1e-5, rtol=1e-4))
    assert bool(jnp.allclose(quantizes, quantizes_r, atol=1e-5, rtol=1e-4))
    assert bool(jnp.allclose(z_q, z_q_r, atol=1e-5, rtol=1e-4))

    # Second check: a larger token count exercises the multi-tile grid, the
    # lane-dense idx rows and an overhanging trailing block (N % tile != 0).
    xb = jax.random.normal(k_b1, (1000, dim), dtype=jnp.float32)
    embed_b = jax.random.normal(k_b2, (dim, n_embed), dtype=jnp.float32)
    q_b, zq_b, idx_b = jax.block_until_ready(
        _nearest_code_pallas(xb, embed_b, tile_n=512))
    dist_b = (jnp.sum(xb * xb, axis=1, keepdims=True)
              - 2.0 * jnp.dot(xb, embed_b, precision=jax.lax.Precision.HIGHEST)
              + jnp.sum(embed_b * embed_b, axis=0, keepdims=True))
    chosen = jnp.take_along_axis(dist_b, idx_b[:, None], axis=1)[:, 0]
    assert idx_b.shape == (1000,) and idx_b.dtype == jnp.int32
    assert bool(jnp.all((idx_b >= 0) & (idx_b < n_embed)))
    assert bool(jnp.all(chosen <= jnp.min(dist_b, axis=1) + 1e-3))  # (near-)optimal codes
    assert bool(jnp.allclose(q_b, embed_b.T[idx_b], atol=1e-5, rtol=1e-4))
    assert bool(jnp.allclose(zq_b, q_b, atol=1e-5, rtol=1e-4))

    print("KERNEL_OK")
</pallas_src>

<mosaic_0001>
module attributes {stable_mosaic.version = 11 : i64} {
  func.func @_nearest_code_kernel(%arg0: i32, %arg1: memref<16x32xf32, #tpu.memory_space<vmem>>, %arg2: memref<32x64xf32, #tpu.memory_space<vmem>>, %arg3: memref<64x32xf32, #tpu.memory_space<vmem>>, %arg4: memref<1x64xf32, #tpu.memory_space<vmem>>, %arg5: memref<16x32xf32, #tpu.memory_space<vmem>>, %arg6: memref<16x32xf32, #tpu.memory_space<vmem>>, %arg7: memref<1x1x16xi32, #tpu.memory_space<vmem>>) attributes {dimension_semantics = [#tpu.dimension_semantics<parallel>], iteration_bounds = array<i64: 1>, scalar_prefetch = 0 : i64, scratch_operands = 0 : i64, tpu.core_type = #tpu.core_type<tc>, window_params = [{transform_indices = @transform_0, window_bounds = array<i64: 16, 32>}, {pipeline_mode = #tpu.pipeline_mode<synchronous>, transform_indices = @transform_1, window_bounds = array<i64: 32, 64>}, {pipeline_mode = #tpu.pipeline_mode<synchronous>, transform_indices = @transform_2, window_bounds = array<i64: 64, 32>}, {pipeline_mode = #tpu.pipeline_mode<synchronous>, transform_indices = @transform_3, window_bounds = array<i64: 1, 64>}, {transform_indices = @transform_4, window_bounds = array<i64: 16, 32>}, {transform_indices = @transform_5, window_bounds = array<i64: 16, 32>}, {transform_indices = @transform_6, window_bounds = array<i64: 1, 1, 16>}]} {
    %c0 = arith.constant 0 : index
    %c0_0 = arith.constant 0 : index
    %0 = vector.load %arg1[%c0, %c0_0] : memref<16x32xf32, #tpu.memory_space<vmem>>, vector<16x32xf32>
    %c0_1 = arith.constant 0 : index
    %c0_2 = arith.constant 0 : index
    %1 = vector.load %arg2[%c0_1, %c0_2] : memref<32x64xf32, #tpu.memory_space<vmem>>, vector<32x64xf32>
    %c0_3 = arith.constant 0 : index
    %c0_4 = arith.constant 0 : index
    %2 = vector.load %arg3[%c0_3, %c0_4] : memref<64x32xf32, #tpu.memory_space<vmem>>, vector<64x32xf32>
    %cst = arith.constant dense<0.000000e+00> : vector<16x64xf32>
    %3 = tpu.matmul %0, %1, %cst {dimension_numbers = #tpu.dot_dimension_numbers<[1], [0], [0], [1], [0, 0, 1, 1], [], []>} : vector<16x32xf32>, vector<32x64xf32>, vector<16x64xf32> -> vector<16x64xf32>
    %c0_5 = arith.constant 0 : index
    %c0_6 = arith.constant 0 : index
    %4 = vector.load %arg4[%c0_5, %c0_6] : memref<1x64xf32, #tpu.memory_space<vmem>>, vector<1x64xf32>
    %cst_7 = arith.constant 2.000000e+00 : f32
    %5 = vector.broadcast %cst_7 : f32 to vector<16x64xf32>
    %6 = arith.mulf %5, %3 : vector<16x64xf32>
    %7 = vector.broadcast %4 : vector<1x64xf32> to vector<16x64xf32>
    %8 = arith.subf %7, %6 : vector<16x64xf32>
    %9 = tpu.reduce_index %8 {axis = 1 : i32, kind = #tpu.reduction_kind<arg_min>} : vector<16x64xf32> -> vector<16xi32>
    %10 = vector.shape_cast %9 : vector<16xi32> to vector<16x1xi32>
    %11 = tpu.iota {dimensions = array<i32: 1>} : vector<16x64xi32>
    %12 = vector.broadcast %10 : vector<16x1xi32> to vector<16x64xi32>
    %13 = arith.cmpi eq, %11, %12 : vector<16x64xi32>
    %14 = arith.extui %13 : vector<16x64xi1> to vector<16x64xi32>
    %15 = arith.sitofp %14 : vector<16x64xi32> to vector<16x64xf32>
    %cst_8 = arith.constant dense<0.000000e+00> : vector<16x32xf32>
    %16 = tpu.matmul %15, %2, %cst_8 {dimension_numbers = #tpu.dot_dimension_numbers<[1], [0], [0], [1], [0, 0, 1, 1], [], []>} : vector<16x64xf32>, vector<64x32xf32>, vector<16x32xf32> -> vector<16x32xf32>
    %c0_9 = arith.constant 0 : index
    %c0_10 = arith.constant 0 : index
    %17 = vector.load %arg5[%c0_9, %c0_10] : memref<16x32xf32, #tpu.memory_space<vmem>>, vector<16x32xf32>
    tpu.vector_store %arg5[%c0_9, %c0_10], %16 {strides = array<i32>} : memref<16x32xf32, #tpu.memory_space<vmem>>, vector<16x32xf32>,
    %18 = arith.subf %16, %0 : vector<16x32xf32>
    %19 = arith.addf %0, %18 : vector<16x32xf32>
    %c0_11 = arith.constant 0 : index
    %c0_12 = arith.constant 0 : index
    %20 = vector.load %arg6[%c0_11, %c0_12] : memref<16x32xf32, #tpu.memory_space<vmem>>, vector<16x32xf32>
    tpu.vector_store %arg6[%c0_11, %c0_12], %19 {strides = array<i32>} : memref<16x32xf32, #tpu.memory_space<vmem>>, vector<16x32xf32>,
    %21 = tpu.iota {dimensions = array<i32: 1>} : vector<8x64xi32>
    %22 = arith.sitofp %21 : vector<8x64xi32> to vector<8x64xf32>
    %cst_13 = arith.constant dense<0.000000e+00> : vector<8x16xf32>
    %23 = tpu.matmul %22, %15, %cst_13 {dimension_numbers = #tpu.dot_dimension_numbers<[1], [1], [0], [0], [0, 0, 1, 0], [], []>} : vector<8x64xf32>, vector<16x64xf32>, vector<8x16xf32> -> vector<8x16xf32>
    %24 = vector.extract_strided_slice %23 {offsets = [0, 0], sizes = [1, 16], strides = [1, 1]} : vector<8x16xf32> to vector<1x16xf32>
    %25 = vector.shape_cast %24 : vector<1x16xf32> to vector<1x1x16xf32>
    %26 = arith.fptosi %25 : vector<1x1x16xf32> to vector<1x1x16xi32>
    %c0_14 = arith.constant 0 : index
    %c0_15 = arith.constant 0 : index
    %c0_16 = arith.constant 0 : index
    %27 = vector.load %arg7[%c0_14, %c0_15, %c0_16] : memref<1x1x16xi32, #tpu.memory_space<vmem>>, vector<1x1x16xi32>
    tpu.vector_store %arg7[%c0_14, %c0_15, %c0_16], %26 {strides = array<i32>} : memref<1x1x16xi32, #tpu.memory_space<vmem>>, vector<1x1x16xi32>,
    return
  }
  func.func @transform_0(%arg0: i32) -> (i32, i32) {
    %c0_i32 = arith.constant 0 : i32
    %c0_i32_0 = arith.constant 0 : i32
    return %arg0, %c0_i32 : i32, i32
  }
  func.func @transform_1(%arg0: i32) -> (i32, i32) {
    %c0_i32 = arith.constant 0 : i32
    %c0_i32_0 = arith.constant 0 : i32
    %c0_i32_1 = arith.constant 0 : i32
    return %c0_i32, %c0_i32_0 : i32, i32
  }
  func.func @transform_2(%arg0: i32) -> (i32, i32) {
    %c0_i32 = arith.constant 0 : i32
    %c0_i32_0 = arith.constant 0 : i32
    %c0_i32_1 = arith.constant 0 : i32
    return %c0_i32, %c0_i32_0 : i32, i32
  }
  func.func @transform_3(%arg0: i32) -> (i32, i32) {
    %c0_i32 = arith.constant 0 : i32
    %c0_i32_0 = arith.constant 0 : i32
    %c0_i32_1 = arith.constant 0 : i32
    return %c0_i32, %c0_i32_0 : i32, i32
  }
  func.func @transform_4(%arg0: i32) -> (i32, i32) {
    %c0_i32 = arith.constant 0 : i32
    %c0_i32_0 = arith.constant 0 : i32
    return %arg0, %c0_i32 : i32, i32
  }
  func.func @transform_5(%arg0: i32) -> (i32, i32) {
    %c0_i32 = arith.constant 0 : i32
    %c0_i32_0 = arith.constant 0 : i32
    return %arg0, %c0_i32 : i32, i32
  }
  func.func @transform_6(%arg0: i32) -> (i32, i32, i32) {
    %c0_i32 = arith.constant 0 : i32
    %c0_i32_0 = arith.constant 0 : i32
    %c0_i32_1 = arith.constant 0 : i32
    return %arg0, %c0_i32, %c0_i32_0 : i32, i32, i32
  }
}

</mosaic_0001>

<bundles_post_ra>
// kernel: _nearest_code_pallas.1
= control target key start
LH: loop header
LB: loop body
LE: loop exit
PB: predicated region body
PF: predicated region fallthrough
CT: control target
= control target key end

     0   :  { %12 = vsyncpa [#allocation3], 0  ;;  %vm36_vm0 = vcmask 261120   ;;  %s676_s0 = inlined_call_operand.vmem [shape: f32[16,32], index: 0, kind: input, shape index: {}]   ;;  %s677_s1 = inlined_call_operand.vmem [shape: f32[32,64], index: 1, kind: input, shape index: {}]   ;;  %s678_s2 = inlined_call_operand.vmem [shape: f32[64,32], index: 2, kind: input, shape index: {}]   ;;  %s679_s3 = inlined_call_operand.vmem [shape: f32[1,64], index: 3, kind: input, shape index: {}]   ;;  %s680_s4 = inlined_call_operand.hbm [shape: f32[16,32], index: 4, kind: output, shape index: {0}]   ;;  %s681_s5 = inlined_call_operand.hbm [shape: f32[16,32], index: 5, kind: output, shape index: {1}]   ;;  %s682_s6 = inlined_call_operand.hbm [shape: s32[1,1,16], index: 6, kind: output, shape index: {2}]  }
   0x1   :  { %v24_v0 = vld [vmem:[%s677_s1] sm:$0xff]  ;;  %v25_v1 = vld [vmem:[%s677_s1 + $0x8] sm:$0xff]  ;;  %v26_v2 = vld [vmem:[%s677_s1 + $0x10] sm:$0xff] }
   0x2   :  { %v421_v3 = vpack.c.bf16 %v25_v1, %v24_v0  ;;  %v27_v4 = vld [vmem:[%s677_s1 + $0x18] sm:$0xff]  ;;  %v587_v5 = vld [vmem:[%s676_s0] sm:$0xff] }
   0x3   :  { %v425_v6 = vpack.c.bf16 %v27_v4, %v26_v2  ;;  %392 = vmatprep.mubr.msk.f32.mxu0 %vm36_vm0, %v587_v5 }
   0x4   :  { %13 = vsyncpa [#allocation5], 0  ;;  %422 = vmatprep.subr.bf16.mxu0 %v421_v3  ;;  %v594_v7 = vld [vmem:[%s676_s0 + $0x8] sm:$0xff]  ;;  %v28_v8 = vld [vmem:[%s678_s2] sm:$0xff]  ;;  %vm129_vm1 = vcmask 523264   ;;  %v529_v29 = vmov 0.0|0.0   ;;  %v136_v31 = vlaneseq }
   0x5   :  { %424 = vmatpush3.bf16.msra.mxu0 %v421_v3  ;;  %v29_v9 = vld [vmem:[%s678_s2 + $0x8] sm:$0xff]  ;;  %v30_v10 = vld [vmem:[%s678_s2 + $0x10] sm:$0xff]  ;;  %v31_v12 = vld [vmem:[%s678_s2 + $0x18] sm:$0xff]  ;;  %vm530_vm2 = vmmov 0   ;;  %v531_v30 = vmov 0.0   ;;  %s533_s25 = smov [#allocation4]  }
   0x6   :  { %426 = vmatprep.subr.bf16.mxu0 %v425_v6  ;;  %v429_v11 = vpack.c.bf16 %v29_v9, %v28_v8  ;;  %v433_v13 = vpack.c.bf16 %v31_v12, %v30_v10  ;;  %v32_v14 = vld [vmem:[%s678_s2 + $0x20] sm:$0xff]  ;;  %v33_v15 = vld [vmem:[%s678_s2 + $0x28] sm:$0xff]  ;;  %v34_v26 = vld [vmem:[%s678_s2 + $0x30] sm:$0xff]  ;;  %v137_v32 = vand.u32 127, %v136_v31  ;;  %s327_s26 = sshll.u32 %s533_s25, 4  ;;  %s328_s26 = int_to_ptr.vmem [resolvable:$true] %s327_s26 }
   0x7   :  { %v437_v16 = vpack.c.bf16 %v33_v15, %v32_v14  ;;  %v357_v19 = vld [vmem:[%s679_s3] ss:$0 sm:$0xff]  ;;  %v35_v27 = vld [vmem:[%s678_s2 + $0x38] sm:$0xff]  ;;  %vm447_vm5 = vmpackc.low %vm129_vm1, %vm129_vm1  ;;  %s532_s2 = smov [#allocation2]  }
   0x8   :  { %430 = vmatprep.subr.bf16.mxu1 %v429_v11  ;;  %v441_v28 = vpack.c.bf16 %v35_v27, %v34_v26  ;;  %v233_v38 = vcvt.s32.f32 %v137_v32  ;;  %s315_s3 = sshll.u32 %s532_s2, 4  ;;  %s316_s3 = int_to_ptr.vmem [resolvable:$true] %s315_s3 }
   0x9   :  { %428 = vmatpush3.bf16.msra.mxu0 %v425_v6  ;;  %432 = vmatpush3.bf16.msra.mxu1 %v429_v11  ;;  %s459_s27 = scalar_lea.vmem %s316_s3, 256  ;;  %p464_p1 = scmp.lt.s32.totalorder %s316_s3, %s316_s3 }
   0xa   :  { %434 = vmatprep.subr.bf16.mxu1 %v433_v13  ;;  %445 = vmatprep.subr.bf16.mxu0 %v529_v29  ;;  %p460_p0 = scmp.ne.s32.totalorder %s316_s3, %s459_s27  ;;  %p465_p2 = scmp.lt.s32.totalorder %s459_s27, %s459_s27 }
   0xc   :  { %393 = vmatmul.mubr.msk.f32.vlgmr.msra.gmra.mrb[0].mxu0 %vm36_vm0, %v594_v7  ;;  %p466_p3 = por %p465_p2, %p464_p1 }
   0xd   :  { %436 = vmatpush3.bf16.msra.mxu1 %v433_v13  ;;  %418 = vmatprep.mubr.msk.f32.mxu0 %vm530_vm2, %v531_v30 }
   0xe   :  { %438 = vmatprep.subr.bf16.mxu1 %v437_v16  ;;  %p467_p4 = pnand %p466_p3, %p460_p0 }
  0x11   :  { %440 = vmatpush3.bf16.msra.mxu1 %v437_v16 }
  0x12   :  { %442 = vmatprep.subr.bf16.mxu1 %v441_v28 }
  0x15   :  { %444 = vmatpush3.bf16.msra.mxu1 %v441_v28 }
  0xdf   :  { %v394_v17 = vpop.f32.mrb[0].mxu0 }
  0xe0   :  { %v109_v18 = vpop.f32.mrb[1].mxu0  ;;  %v120_v20 = vmul.f32 2.0, %v394_v17 }
  0xe1   :  { %v119_v21 = vmul.f32 2.0, %v109_v18 }
  0xe2   :  { %v128_v24 = vsub.f32 %v357_v19, %v120_v20 }
  0xe3   :  { %v127_v22 = vsub.f32 %v357_v19, %v119_v21 }
  0xe4   :  { %v133_v25 = vsel %vm129_vm1, %v128_v24, inf }
  0xe5   :  { %v130_v23 = vsel %vm129_vm1, %v127_v22, inf }
  0xe6   :  { %131 = vmin.index.xlane.f32.xlu0 %v130_v23 }
  0xea   :  { %134 = vmin.index.xlane.f32.xlu0 %v133_v25 }
 0x173   :  { %v132_v33 = vpop.xlane.xlu0 %131 }
 0x174   :  { %vm138_vm3 = vcmp.eq.s32.totalorder %v137_v32, %v132_v33 }
 0x175   :  { %v358_v34 = vsel %vm138_vm3, 1.0, %v531_v30 }
 0x176   :  { %411 = vmatprep.mubr.msk.f32.mxu1 %vm129_vm1, %v358_v34 }
 0x177   :  { %v135_v35 = vpop.xlane.xlu0 %134 }
 0x178   :  { %vm139_vm4 = vcmp.eq.s32.totalorder %v137_v32, %v135_v35 }
 0x179   :  { %v359_v36 = vsel %vm139_vm4, 1.0, %v531_v30 }
 0x17a   :  { %v446_v37 = vpack.c.bf16 %v359_v36, %v358_v34  ;;  %412 = vmatmul.mubr.msk.f32.vlgmr.msra.gmra.mrb[0].mxu1 %vm129_vm1, %v359_v36 }
 0x17c   :  { %448 = vmatpush3.bf16.xpose.msk.msra.mxu0 %vm447_vm5, %v446_v37 }
 0x183   :  { %419 = vmatmul.mubr.msk.f32.vlgmr.msra.gmra.mrb[2].mxu0 %vm129_vm1, %v233_v38 }
 0x24d   :  { %v413_v39 = vpop.f32.mrb[0].mxu1 }
 0x24e   :  { %226 = vst.msk [vmem:[#allocation2 + $0x8] sm:$0xff] %vm36_vm0, %v413_v39  ;;  %v228_v40 = vsub.f32 %v413_v39, %v594_v7  ;;  %v216_v41 = vpop.f32.mrb[1].mxu1 }
 0x24f   :  { %225 = vst.msk [vmem:[#allocation2] sm:$0xff] %vm36_vm0, %v216_v41  ;;  %v227_v42 = vsub.f32 %v216_v41, %v587_v5 }
 0x250   :  { %v230_v43 = vadd.f32 %v228_v40, %v594_v7 }
 0x251   :  { %470 = shalt.err (!%p467_p4)
}
 0x252   :  { %s471_s30 = scalar_lea.hbm %s680_s4, 256 }
 0x253   :  { %p472_p5 = scmp.ne.s32.totalorder %s680_s4, %s471_s30  ;;  %p475_p6 = scmp.lt.u32.totalorder %s471_s30, %s680_s4 }
 0x255   :  { %p477_p7 = pnand %p475_p6, %p472_p5 }
 0x257   :  { %480 = shalt.err (!%p477_p7)
}
 0x258   :  { %s534_s10 = smov 128   ;;  %s535_s11 = smov 8   ;;  %v229_v44 = vadd.f32 %v227_v42, %v587_v5  ;;  %232 = vst.msk [vmem:[#allocation4 + $0x8] sm:$0xff] %vm36_vm0, %v230_v43 }
 0x259   :  { %321 = dma.vmem_to_hbm [thread:$0]  %s316_s3, 256, %s680_s4, [#allocation3], %s534_s10, %s534_s10, %s535_s11  }
 0x25a   :  { %231 = vst.msk [vmem:[#allocation4] sm:$0xff] %vm36_vm0, %v229_v44  ;;  %s481_s14 = scalar_lea.vmem %s328_s26, 256  ;;  %p486_p9 = scmp.lt.s32.totalorder %s328_s26, %s328_s26 }
 0x25b   :  { %p482_p8 = scmp.ne.s32.totalorder %s328_s26, %s481_s14  ;;  %p487_p10 = scmp.lt.s32.totalorder %s481_s14, %s481_s14 }
 0x25d   :  { %p488_p11 = por %p487_p10, %p486_p9 }
 0x25f   :  { %p489_p12 = pnand %p488_p11, %p482_p8 }
 0x261   :  { %492 = shalt.err (!%p489_p12)
}
 0x262   :  { %s493_s16 = scalar_lea.hbm %s681_s5, 256 }
 0x263   :  { %p494_p13 = scmp.ne.s32.totalorder %s681_s5, %s493_s16  ;;  %p497_p0 = scmp.lt.u32.totalorder %s493_s16, %s681_s5 }
 0x265   :  { %p499_p1 = pnand %p497_p0, %p494_p13 }
 0x267   :  { %502 = shalt.err (!%p499_p1)
}
 0x268   :  { %333 = dma.vmem_to_hbm [thread:$0]  %s328_s26, 256, %s681_s5, [#allocation5], %s534_s10, %s534_s10, %s535_s11   ;;  %v303_v45 = vpop.f32.mrb[2].mxu0  ;;  %vm308_vm6 = vcmask 122880  }
 0x269   :  { %s536_s22 = smov [#allocation6]   ;;  %v449_v46 = vtrunc.f32 %v303_v45  ;;  %v420_v47 = vpop.f32.mrb[3].mxu0 }
 0x26a   :  { %s340_s23 = sshll.u32 %s536_s22, 4  ;;  %s341_s23 = int_to_ptr.vmem [resolvable:$true] %s340_s23 }
 0x26b   :  { %v450_v48 = vcvt.f32.s32 %v449_v46  ;;  %s503_s24 = scalar_lea.vmem %s341_s23, 16  ;;  %s507_s2 = scalar_lea.vmem %s341_s23, 32 }
 0x26c   :  { %p504_p2 = scmp.ne.s32.totalorder %s341_s23, %s503_s24  ;;  %p508_p3 = scmp.lt.s32.totalorder %s341_s23, %s341_s23 }
 0x26d   :  { %309 = vst.msk [vmem:[#allocation6] sm:$0x1] %vm308_vm6, %v450_v48  ;;  %p509_p4 = scmp.lt.s32.totalorder %s507_s2, %s503_s24 }
 0x26f   :  { %p510_p5 = por %p509_p4, %p508_p3 }
 0x271   :  { %p511_p6 = pnand %p510_p5, %p504_p2 }
 0x273   :  { %514 = shalt.err (!%p511_p6)
}
 0x274   :  { %s515_s5 = scalar_lea.hbm %s682_s6, 16 }
 0x275   :  { %p516_p7 = scmp.ne.s32.totalorder %s682_s6, %s515_s5  ;;  %p519_p8 = scmp.lt.u32.totalorder %s515_s5, %s682_s6 }
 0x277   :  { %p521_p9 = pnand %p519_p8, %p516_p7 }
 0x279   :  { %524 = shalt.err (!%p521_p9)
}
 0x27a   :  { %343 = dma.vmem_to_hbm [thread:$0]  %s341_s23, 16, %s682_s6, [#allocation5]  }
 0x27b   :  { %525 = dma.done.wait [#allocation3], 256  }
 0x27c   :  { %526 = vsyncadd [#allocation3], 4294967040 }
 0x27d   :  { %527 = dma.done.wait [#allocation5], 272  }
 0x27e   :  { %528 = vsyncadd [#allocation5], 4294967024 }
 0x27f   :  { %353 = vsyncpa [#allocation3], 1 }
 0x280   :  { %354 = vsyncpa [#allocation5], 1 }

</bundles_post_ra>
